<compile_context>
chip_gen: v6e
topology: v6e:2x2x1
jax: 0.10.0
libtpu: 0.0.40
codegen_flags: <defaults>
</compile_context>

<pallas_src>
from functools import partial

import jax
import jax.numpy as jnp
from jax.experimental import pallas as pl
from jax.experimental.pallas import tpu as pltpu


_VMEM_LIMIT = 32 * 1024 * 1024     # safe on v5e/v6e (128 MiB) and v7x (64 MiB/TC)
_CHUNK = 2048                      # spatial rows per in-kernel matmul chunk


# ---------------------------------------------------------------------------
# padded-flat layout helpers
# ---------------------------------------------------------------------------
def _round_up(x, m):
    return (x + m - 1) // m * m


def _next_pow2(x):
    return 1 << (int(x) - 1).bit_length()


def _row_stride(w):
    # image row stride (>= W+2), power of two and multiple of 16 so that
    # +/-row tap reads stay sublane aligned (bf16) and the in-kernel row/col
    # computation is shift/and.
    return max(16, _next_pow2(w + 2))


def _halo(rs):
    # zero halo before/after the (H+2)*RS flat block so every tap-shifted read
    # (offsets down to -(RS+1)) stays in bounds; multiple of 16.
    return rs + 16


def _to_padded_flat(x_nhwc):
    n, h, w, c = x_nhwc.shape
    rs = _row_stride(w)
    g = _halo(rs)
    xp = jnp.pad(x_nhwc, ((0, 0), (1, 1), (1, rs - w - 1), (0, 0)))
    xf = xp.reshape(n, (h + 2) * rs, c)
    return jnp.pad(xf, ((0, 0), (g, g), (0, 0)))


def _from_padded_flat(x_pf, h, w):
    n, _, c = x_pf.shape
    rs = _row_stride(w)
    g = _halo(rs)
    s = (h + 2) * rs
    xi = x_pf[:, g:g + s, :].reshape(n, h + 2, rs, c)
    return xi[:, 1:h + 1, 1:w + 1, :]


# ---------------------------------------------------------------------------
# fused bf16 matmul kernel (stride-2 convs, input conv, 1x1 shortcuts, head)
# ---------------------------------------------------------------------------
def _mm_kernel(x_ref, w_ref, s_ref, t_ref, o_ref, *, relu):
    acc = jnp.dot(x_ref[...], w_ref[...], preferred_element_type=jnp.float32)
    y = acc * s_ref[...] + t_ref[...]
    if relu:
        y = jnp.maximum(y, 0.0)
    o_ref[...] = y.astype(o_ref.dtype)


def _mm_res_kernel(x_ref, w_ref, s_ref, t_ref, r_ref, o_ref):
    acc = jnp.dot(x_ref[...], w_ref[...], preferred_element_type=jnp.float32)
    y = acc * s_ref[...] + t_ref[...] + r_ref[...].astype(jnp.float32)
    o_ref[...] = y.astype(o_ref.dtype)


def _pick_tile_m(m, max_tm=512):
    mr = _round_up(m, 8)
    tm = min(max_tm, mr)
    tm = max(8, tm - tm % 8)
    while mr % tm:
        tm -= 8
    return tm, mr


@partial(jax.jit, static_argnames=("relu", "has_residual"))
def _fused_matmul(x, w, scale, shift, residual=None, *, relu=False,
                  has_residual=False):
    """maybe_relu((x @ w) * scale + shift) [+ residual]; bf16 in/out, f32 acc.

    Full-K blocks (no K grid axis, no K padding); adaptive M tile chosen as a
    divisor of round_up(M, 8) so no padded copies are made for this network."""
    assert not (relu and has_residual)
    m, k = x.shape
    n_out = w.shape[1]
    tm, mp = _pick_tile_m(m)
    tn = min(n_out, 256)
    if mp // tm == 1 and n_out // tn == 1 and mp >= 16:
        # make sure there are >= 2 parallel grid blocks (megacore / v7x)
        tm, mp = _pick_tile_m(m, max_tm=mp // 2)
    if mp != m:
        x = jnp.zeros((mp, k), x.dtype).at[:m].set(x)

    in_specs = [pl.BlockSpec((tm, k), lambda i, j: (i, 0)),
                pl.BlockSpec((k, tn), lambda i, j: (0, j)),
                pl.BlockSpec((1, tn), lambda i, j: (0, j)),
                pl.BlockSpec((1, tn), lambda i, j: (0, j))]
    args = [x, w, scale, shift]
    if has_residual:
        if mp != m:
            residual = jnp.zeros((mp, n_out), residual.dtype).at[:m].set(residual)
        in_specs.append(pl.BlockSpec((tm, tn), lambda i, j: (i, j)))
        args.append(residual)
        kernel = _mm_res_kernel
    else:
        kernel = partial(_mm_kernel, relu=relu)

    out = pl.pallas_call(
        kernel,
        out_shape=jax.ShapeDtypeStruct((mp, n_out), jnp.bfloat16),
        grid_spec=pltpu.PrefetchScalarGridSpec(
            num_scalar_prefetch=0,
            grid=(mp // tm, n_out // tn),
            in_specs=in_specs,
            out_specs=pl.BlockSpec((tm, tn), lambda i, j: (i, j)),
        ),
        compiler_params=pltpu.CompilerParams(
            dimension_semantics=("parallel", "parallel"),
            vmem_limit_bytes=_VMEM_LIMIT),
    )(*args)
    return out[:m] if mp != m else out


# ---------------------------------------------------------------------------
# implicit-im2col 3x3 stride-1 conv kernel (fused BN-in / BN-out / ReLU / res)
# ---------------------------------------------------------------------------
def _make_implicit_conv_kernel(chunks, G, RS, H, W, relu, in_affine, has_res,
                               n_slab):
    S = (H + 2) * RS
    rs_shift = RS.bit_length() - 1
    rs_mask = RS - 1
    taps = tuple((kh - 1) * RS + (kw - 1)
                 for kh in range(3) for kw in range(3))

    def interior(cs, pos0):
        # (cs, 1) bool: True where flat position pos0+i is a real image pixel
        # (not the zero ring / row-stride padding / halo).  RS is a power of
        # two, and the +2*RS bias keeps the index non-negative.
        idx = jax.lax.broadcasted_iota(jnp.int32, (cs, 1), 0) + (pos0 + 2 * RS)
        r = jnp.right_shift(idx, rs_shift)
        c = jnp.bitwise_and(idx, rs_mask)
        return (r >= 3) & (r <= H + 2) & (c >= 1) & (c <= W)

    def kernel(*refs):
        x_ref, w_ref, s_ref, t_ref = refs[:4]
        i = 4
        if in_affine:
            si_ref, ti_ref = refs[i], refs[i + 1]
            i += 2
        if has_res:
            r_ref = refs[i]
            i += 1
        o_ref = refs[i]
        slabs = refs[i + 1:i + 1 + n_slab]

        tn = o_ref.shape[-1]
        cin = x_ref.shape[-1]

        # keep the padded-flat invariant: halo rows of the output stay zero
        o_ref[0, 0:G, :] = jnp.zeros((G, tn), o_ref.dtype)
        o_ref[0, G + S:G + S + G, :] = jnp.zeros((G, tn), o_ref.dtype)

        if in_affine:
            si = si_ref[...]
            ti = ti_ref[...]
        sc = s_ref[...]
        sh = t_ref[...]

        for ci, (c0, cs) in enumerate(chunks):
            sl = slabs[ci % n_slab]
            # implicit im2col: build the (cs, 9*cin) patch slab for this chunk;
            # bn1 (eval-mode affine) + border masking are fused into the copy.
            for t, d in enumerate(taps):
                src = G + c0 + d
                a = x_ref[0, src:src + cs, :]
                if in_affine:
                    af = a.astype(jnp.float32) * si + ti
                    a = jnp.where(interior(cs, c0 + d), af,
                                  0.0).astype(jnp.bfloat16)
                sl[0:cs, t * cin:(t + 1) * cin] = a
            # one full-K (9*cin) MXU matmul per chunk
            acc = jnp.dot(sl[0:cs, :], w_ref[...],
                          preferred_element_type=jnp.float32)
            y = acc * sc + sh
            if relu:
                y = jnp.maximum(y, 0.0)
            # re-zero ring / padding columns so the buffer feeds the next conv
            y = jnp.where(interior(cs, c0), y, 0.0)
            if has_res:
                y = y + r_ref[0, G + c0:G + c0 + cs, :].astype(jnp.float32)
            o_ref[0, G + c0:G + c0 + cs, :] = y.astype(o_ref.dtype)

    return kernel


@partial(jax.jit, static_argnames=("H", "W", "relu", "in_affine", "has_res"))
def _implicit_conv(x_pf, w, scale, shift, si, ti, residual, *, H, W, relu,
                   in_affine, has_res):
    """3x3 stride-1 conv on a padded-flat (N, halo+(H+2)*RS+halo, Cin) tensor."""
    n, sp, cin = x_pf.shape
    cout = w.shape[-1]
    rs = _row_stride(W)
    g = _halo(rs)
    S = (H + 2) * rs
    assert sp == S + 2 * g and w.shape[0] == 9 * cin
    tn = min(cout, 256)

    chunks = []
    c0 = 0
    while c0 < S:
        cs = min(_CHUNK, S - c0)
        chunks.append((c0, cs))
        c0 += cs
    n_slab = min(2, len(chunks))           # alternate slab buffers for overlap

    kernel = _make_implicit_conv_kernel(tuple(chunks), g, rs, H, W, relu,
                                        in_affine, has_res, n_slab)

    in_specs = [pl.BlockSpec((1, sp, cin), lambda j, b: (b, 0, 0)),
                pl.BlockSpec((9 * cin, tn), lambda j, b: (0, j)),
                pl.BlockSpec((1, tn), lambda j, b: (0, j)),
                pl.BlockSpec((1, tn), lambda j, b: (0, j))]
    args = [x_pf, w, scale, shift]
    if in_affine:
        in_specs += [pl.BlockSpec((1, cin), lambda j, b: (0, 0)),
                     pl.BlockSpec((1, cin), lambda j, b: (0, 0))]
        args += [si, ti]
    if has_res:
        in_specs.append(pl.BlockSpec((1, sp, tn), lambda j, b: (b, 0, j)))
        args.append(residual)
    scratch = [pltpu.VMEM((chunks[0][1], 9 * cin), jnp.bfloat16)
               for _ in range(n_slab)]

    return pl.pallas_call(
        kernel,
        out_shape=jax.ShapeDtypeStruct((n, sp, cout), jnp.bfloat16),
        grid_spec=pltpu.PrefetchScalarGridSpec(
            num_scalar_prefetch=0,
            # batch is the fastest axis so the weight block index is constant
            # across consecutive grid steps (no per-batch weight re-fetch).
            grid=(cout // tn, n),
            in_specs=in_specs,
            out_specs=pl.BlockSpec((1, sp, tn), lambda j, b: (b, 0, j)),
            scratch_shapes=scratch),
        compiler_params=pltpu.CompilerParams(
            dimension_semantics=("parallel", "parallel"),
            vmem_limit_bytes=_VMEM_LIMIT),
    )(*args)


# ---------------------------------------------------------------------------
# im2col glue (XLA, only for the 5 strided / input convs)
# ---------------------------------------------------------------------------
def _im2col(xpad, stride):
    """xpad: already zero-padded NHWC -> (N*Ho*Wo, 9*C), columns (kh, kw, cin)."""
    n, hp, wp, c = xpad.shape
    ho = (hp - 3) // stride + 1
    wo = (wp - 3) // stride + 1
    cols = []
    for kh in range(3):
        for kw in range(3):
            sl = xpad[:, kh:kh + (ho - 1) * stride + 1:stride,
                         kw:kw + (wo - 1) * stride + 1:stride, :]
            cols.append(sl)
    patches = jnp.concatenate(cols, axis=-1)
    return patches.reshape(n * ho * wo, 9 * c), (n, ho, wo)


# ---------------------------------------------------------------------------
# IR-50 architecture config + preprocessed parameter init
# ---------------------------------------------------------------------------
def get_block_cfg(num_layers=50):
    if num_layers == 50:
        spec = [(64, 64, 3), (64, 128, 4), (128, 256, 14), (256, 512, 3)]
    elif num_layers == 100:
        spec = [(64, 64, 3), (64, 128, 13), (128, 256, 30), (256, 512, 3)]
    else:
        spec = [(64, 64, 3), (64, 128, 8), (128, 256, 36), (256, 512, 3)]
    cfg = []
    for in_c, depth, num_units in spec:
        cfg.append((in_c, depth, 2))
        cfg.extend((depth, depth, 1) for _ in range(num_units - 1))
    return tuple(cfg)


def init_params(key, cfg, eps=1e-5):
    keys = iter(jax.random.split(key, 8 * len(cfg) + 32))
    nk = lambda: next(keys)

    def bn(c):
        k1, k2, k3 = jax.random.split(nk(), 3)
        gamma = 1.0 + 0.1 * jax.random.normal(k1, (c,))
        beta = 0.01 * jax.random.normal(k2, (c,))
        mean = 0.01 * jax.random.normal(k3, (c,))
        var = jnp.ones((c,))
        s = gamma / jnp.sqrt(var + eps)
        t = beta - mean * s
        return s.astype(jnp.float32), t.astype(jnp.float32)

    def conv_w(cout, cin, k):
        fan_in = cin * k * k
        return (jax.random.normal(nk(), (cout, cin, k, k))
                * jnp.sqrt(2.0 / fan_in)).astype(jnp.float32)

    def conv3x3_mat(cout, cin):
        w = conv_w(cout, cin, 3)
        # (kh, kw, cin, cout) -> (9*cin, cout): matches the im2col / slab order
        return jnp.transpose(w, (2, 3, 1, 0)).reshape(9 * cin, cout).astype(
            jnp.bfloat16)

    params = {}
    # input layer: Conv(3->64) + BN + ReLU (BN/ReLU fused into matmul epilogue)
    w_in = conv_w(64, 3, 3)
    params["w_in"] = jnp.transpose(w_in, (2, 3, 1, 0)).reshape(27, 64).astype(
        jnp.bfloat16)
    s, t = bn(64)
    params["in_s"], params["in_t"] = s.reshape(1, 64), t.reshape(1, 64)

    blocks = []
    for in_c, depth, stride in cfg:
        p = {}
        if in_c != depth:
            wsc = conv_w(depth, in_c, 1)
            p["wsc"] = wsc.reshape(depth, in_c).T.astype(jnp.bfloat16)
            s, t = bn(depth)
            p["sc_s"], p["sc_t"] = s.reshape(1, depth), t.reshape(1, depth)
        s, t = bn(in_c)
        p["bn1_s"], p["bn1_t"] = s.reshape(1, in_c), t.reshape(1, in_c)
        p["w1"] = conv3x3_mat(depth, in_c)
        p["w2"] = conv3x3_mat(depth, depth)
        s, t = bn(depth)
        p["bn2_s"], p["bn2_t"] = s.reshape(1, depth), t.reshape(1, depth)
        blocks.append(p)
    params["blocks"] = blocks

    # head: BN2d(512) folded into Linear(512*7*7 -> 7), BN1d(7) as epilogue
    ob_s, ob_t = bn(512)
    feat = 512 * 7 * 7
    lin_w = (jax.random.normal(nk(), (7, feat)) / jnp.sqrt(feat)).astype(
        jnp.float32)
    lin_b = (0.01 * jax.random.normal(nk(), (7,))).astype(jnp.float32)
    b1_s, b1_t = bn(7)
    s_exp = jnp.repeat(ob_s, 49)                     # flatten order is (C, H, W)
    t_exp = jnp.repeat(ob_t, 49)
    w_eff = (lin_w * s_exp[None, :]).T               # (25088, 7)
    b_eff = lin_b + lin_w @ t_exp                    # fold out_bn shift
    head_w = jnp.zeros((feat, 128), jnp.float32).at[:, :7].set(w_eff)
    head_s = jnp.zeros((1, 128), jnp.float32).at[0, :7].set(b1_s)
    head_t = jnp.zeros((1, 128), jnp.float32).at[0, :7].set(b_eff * b1_s + b1_t)
    params["head_w"] = head_w.astype(jnp.bfloat16)
    params["head_s"], params["head_t"] = head_s, head_t
    return params


# ---------------------------------------------------------------------------
# forward pass
# ---------------------------------------------------------------------------
def _bottleneck_ir(x_pf, p, in_c, depth, stride, H, W):
    n = x_pf.shape[0]
    one_d = jnp.ones((1, depth), jnp.float32)
    zero_d = jnp.zeros((1, depth), jnp.float32)

    # residual branch: BN1 (input affine) -> conv3x3 s1 -> ReLU   (all fused)
    h_pf = _implicit_conv(x_pf, p["w1"], one_d, zero_d, p["bn1_s"], p["bn1_t"],
                          None, H=H, W=W, relu=True, in_affine=True,
                          has_res=False)

    if stride == 1:
        # -> conv3x3 s1 -> BN2, fused identity-shortcut add (in_c == depth)
        out_pf = _implicit_conv(h_pf, p["w2"], p["bn2_s"], p["bn2_t"], None,
                                None, x_pf, H=H, W=W, relu=False,
                                in_affine=False, has_res=True)
        return out_pf, H, W

    # stride-2 second conv (first block of each stage): im2col + fused matmul
    ho, wo = (H - 1) // 2 + 1, (W - 1) // 2 + 1
    x_int = _from_padded_flat(x_pf, H, W)
    xs = x_int[:, ::2, ::2, :]                              # (N, Ho, Wo, in_c)
    if in_c == depth:
        shortcut = xs.reshape(n * ho * wo, depth)           # MaxPool2d(1, 2)
    else:
        shortcut = _fused_matmul(xs.reshape(-1, in_c), p["wsc"], p["sc_s"],
                                 p["sc_t"], relu=False, has_residual=False)
    rs = _row_stride(W)
    g = _halo(rs)
    s = (H + 2) * rs
    hp = h_pf[:, g:g + s, :].reshape(n, H + 2, rs, depth)[:, :, :W + 2, :]
    patches, _ = _im2col(hp, 2)
    out = _fused_matmul(patches, p["w2"], p["bn2_s"], p["bn2_t"], shortcut,
                        relu=False, has_residual=True)
    out_pf = _to_padded_flat(out.reshape(n, ho, wo, depth))
    return out_pf, ho, wo


@partial(jax.jit, static_argnames=("cfg",))
def backbone_forward(x_nchw, params, cfg):
    x = jnp.transpose(x_nchw, (0, 2, 3, 1)).astype(jnp.bfloat16)     # NHWC bf16
    n = x.shape[0]

    # input layer: Conv(3->64, 3x3, s1, p1) + BN + ReLU (im2col + fused matmul)
    xp = jnp.pad(x, ((0, 0), (1, 1), (1, 1), (0, 0)))
    patches, (_, ho, wo) = _im2col(xp, 1)
    y = _fused_matmul(patches, params["w_in"], params["in_s"], params["in_t"],
                      relu=True, has_residual=False)
    x_pf = _to_padded_flat(y.reshape(n, ho, wo, 64))
    cur_h, cur_w = ho, wo

    # body
    for p, (in_c, depth, stride) in zip(params["blocks"], cfg):
        x_pf, cur_h, cur_w = _bottleneck_ir(x_pf, p, in_c, depth, stride,
                                            cur_h, cur_w)

    # output layer: BN2d(512) [folded] -> Dropout(identity) -> Flatten(C,H,W)
    #               -> Linear(25088, 7) -> BN1d(7) [folded]
    xi = _from_padded_flat(x_pf, cur_h, cur_w)                # (N, 7, 7, 512)
    xflat = jnp.transpose(xi, (0, 3, 1, 2)).reshape(n, -1)
    out = _fused_matmul(xflat, params["head_w"], params["head_s"],
                        params["head_t"], relu=False, has_residual=False)
    return out[:, :7].astype(jnp.float32)


# ---------------------------------------------------------------------------
if __name__ == "__main__":
    key = jax.random.PRNGKey(0)
    pkey, xkey = jax.random.split(key)
    cfg = get_block_cfg(50)
    params = init_params(pkey, cfg)
    # IR-50 with input_size=[112,112]: the head Linear is 512*7*7 -> 7, so the
    # smallest input consistent with the module is 112x112.
    x = jax.random.normal(xkey, (2, 3, 112, 112), dtype=jnp.float32)
    out = backbone_forward(x, params, cfg=cfg)
    out = jax.block_until_ready(out)
    assert out.shape == (2, 7), out.shape
    assert bool(jnp.all(jnp.isfinite(out)))
    print("KERNEL_OK")
</pallas_src>

<mosaic_0001>
module attributes {stable_mosaic.version = 11 : i64} {
  func.func @_mm_kernel(%arg0: i32, %arg1: i32, %arg2: memref<512x27xbf16, #tpu.memory_space<vmem>>, %arg3: memref<27x64xbf16, #tpu.memory_space<vmem>>, %arg4: memref<1x64xf32, #tpu.memory_space<vmem>>, %arg5: memref<1x64xf32, #tpu.memory_space<vmem>>, %arg6: memref<512x64xbf16, #tpu.memory_space<vmem>>) attributes {dimension_semantics = [#tpu.dimension_semantics<parallel>, #tpu.dimension_semantics<parallel>], iteration_bounds = array<i64: 49, 1>, scalar_prefetch = 0 : i64, scratch_operands = 0 : i64, tpu.core_type = #tpu.core_type<tc>, window_params = [{transform_indices = @transform_0, window_bounds = array<i64: 512, 27>}, {transform_indices = @transform_1, window_bounds = array<i64: 27, 64>}, {transform_indices = @transform_2, window_bounds = array<i64: 1, 64>}, {transform_indices = @transform_3, window_bounds = array<i64: 1, 64>}, {transform_indices = @transform_4, window_bounds = array<i64: 512, 64>}]} {
    %c0 = arith.constant 0 : index
    %c0_0 = arith.constant 0 : index
    %0 = vector.load %arg2[%c0, %c0_0] : memref<512x27xbf16, #tpu.memory_space<vmem>>, vector<512x27xbf16>
    %c0_1 = arith.constant 0 : index
    %c0_2 = arith.constant 0 : index
    %1 = vector.load %arg3[%c0_1, %c0_2] : memref<27x64xbf16, #tpu.memory_space<vmem>>, vector<27x64xbf16>
    %cst = arith.constant dense<0.000000e+00> : vector<512x64xf32>
    %2 = tpu.matmul %0, %1, %cst {dimension_numbers = #tpu.dot_dimension_numbers<[1], [0], [0], [1], [0, 0, 1, 1], [], []>} : vector<512x27xbf16>, vector<27x64xbf16>, vector<512x64xf32> -> vector<512x64xf32>
    %c0_3 = arith.constant 0 : index
    %c0_4 = arith.constant 0 : index
    %3 = vector.load %arg4[%c0_3, %c0_4] : memref<1x64xf32, #tpu.memory_space<vmem>>, vector<1x64xf32>
    %4 = vector.broadcast %3 : vector<1x64xf32> to vector<512x64xf32>
    %5 = arith.mulf %2, %4 : vector<512x64xf32>
    %c0_5 = arith.constant 0 : index
    %c0_6 = arith.constant 0 : index
    %6 = vector.load %arg5[%c0_5, %c0_6] : memref<1x64xf32, #tpu.memory_space<vmem>>, vector<1x64xf32>
    %7 = vector.broadcast %6 : vector<1x64xf32> to vector<512x64xf32>
    %8 = arith.addf %5, %7 : vector<512x64xf32>
    %cst_7 = arith.constant 0.000000e+00 : f32
    %9 = vector.broadcast %cst_7 : f32 to vector<512x64xf32>
    %10 = arith.maximumf %8, %9 : vector<512x64xf32>
    %11 = arith.truncf %10 : vector<512x64xf32> to vector<512x64xbf16>
    %c0_8 = arith.constant 0 : index
    %c0_9 = arith.constant 0 : index
    %12 = vector.load %arg6[%c0_8, %c0_9] : memref<512x64xbf16, #tpu.memory_space<vmem>>, vector<512x64xbf16>
    tpu.vector_store %arg6[%c0_8, %c0_9], %11 {strides = array<i32>} : memref<512x64xbf16, #tpu.memory_space<vmem>>, vector<512x64xbf16>,
    return
  }
  func.func @transform_0(%arg0: i32, %arg1: i32) -> (i32, i32) {
    %c0_i32 = arith.constant 0 : i32
    %c0_i32_0 = arith.constant 0 : i32
    return %arg0, %c0_i32 : i32, i32
  }
  func.func @transform_1(%arg0: i32, %arg1: i32) -> (i32, i32) {
    %c0_i32 = arith.constant 0 : i32
    %c0_i32_0 = arith.constant 0 : i32
    return %c0_i32, %arg1 : i32, i32
  }
  func.func @transform_2(%arg0: i32, %arg1: i32) -> (i32, i32) {
    %c0_i32 = arith.constant 0 : i32
    %c0_i32_0 = arith.constant 0 : i32
    return %c0_i32, %arg1 : i32, i32
  }
  func.func @transform_3(%arg0: i32, %arg1: i32) -> (i32, i32) {
    %c0_i32 = arith.constant 0 : i32
    %c0_i32_0 = arith.constant 0 : i32
    return %c0_i32, %arg1 : i32, i32
  }
  func.func @transform_4(%arg0: i32, %arg1: i32) -> (i32, i32) {
    %c0_i32 = arith.constant 0 : i32
    return %arg0, %arg1 : i32, i32
  }
}

</mosaic_0001>

<bundles_post_ra>
// kernel: _fused_matmul.1
= control target key start
LH: loop header
LB: loop body
LE: loop exit
PB: predicated region body
PF: predicated region fallthrough
CT: control target
= control target key end

     0   :  { %s1965_s15 = smov 0   ;;  %s1967_s16 = smov 0   ;;  %s2345_s0 = inlined_call_operand.vmem [shape: bf16[25088,27], index: 0, kind: input, shape index: {}]   ;;  %s2346_s1 = inlined_call_operand.vmem [shape: bf16[27,64], index: 1, kind: input, shape index: {}]   ;;  %s2347_s2 = inlined_call_operand.vmem [shape: f32[1,64], index: 2, kind: input, shape index: {}]   ;;  %s2348_s3 = inlined_call_operand.vmem [shape: f32[1,64], index: 3, kind: input, shape index: {}]   ;;  %s2349_s4 = inlined_call_operand.vmem [shape: bf16[25088,64], index: 4, kind: output, shape index: {}]  }
   0x1   :  { %s1969_s17 = smov 0  }
   0x2 LB: > { %s26_s18 = sadd.s32 1, %s1933_s16  ;;  %p1547_p0 = scmp.ge.s32.totalorder %s1937_s17, 1  ;;  %s1937_s17 = sphi %s1969_s17, %s14_s17   ;;  %s1933_s16 = sphi %s1967_s16, %s2351_s16   ;;  %s1929_s15 = sphi %s1965_s15, %s2350_s15  }
   0x3   : > { %p28_p1 = scmp.ge.s32.totalorder %s26_s18, 49  ;;  %p202_p2 = scmp.lt.s32.totalorder %s1937_s17, 50 }
   0x5   : > { %s2353_s18 = smov (%p28_p1, %s26_s18), 0  ;;  %p203_p3 = pnand %p1547_p0, %p202_p2 }
   0x6   : > { %s1548_s21 = sshll.u32 (!%p203_p3), %s1929_s15, 6 }
   0x7   : > { %206 = sbr.rel (%p203_p3) target bundleno = 294 (0x126), region = 36  ;;  %p242_p4 = scmp.lt.s32.totalorder (!%p203_p3), %s1548_s21, 3135 }
   0xc   : > { %v1881_v0 = vld [vmem:[%s2346_s1 + $0x8] sm:$0x3f]   ;;  %vm603_vm0 = vcmask 1044480   ;;  %vm604_vm1 = vcmask 1045504   ;;  %v1939_v1 = vmov 65535   ;;  %v1882_v5 = vld [vmem:[%s2346_s1] sm:$0xff]  }
   0xd   : > { %v605_v2 = vsel %vm603_vm0, 4294967295, %v1939_v1  ;;  %s2355_s21 = smov (!%p242_p4, %s1548_s21), 3135  ;;  %vm506_vm2 = vcmask 220160   ;;  %v2066_v38 = vld [vmem:[%s2347_s2] ss:$0 sm:$0xff]  ;;  %vm1361_vm3 = vcmask 519168  }
   0xe   : > { %v606_v3 = vsel %vm604_vm1, %v605_v2, 0  ;;  %s1549_s24 = sshll.u32 %s2355_s21, 2  ;;  %v2071_v40 = vld [vmem:[%s2348_s3] ss:$0 sm:$0xff] }
   0xf   : > { %v608_v4 = vand.u32 %v1881_v0, %v606_v3  ;;  %s1997_s27 = scalar_lea.vmem %s2345_s0, %s1549_s24  ;;  %s2086_s8 = scalar_lea.vmem %s2349_s4, %s1549_s24 }
  0x10   : > { %v1883_v6 = vld [vmem:[%s1997_s27] sm:$0xff]   ;;  %v1885_v8 = vld [vmem:[%s1997_s27 + $0x8] sm:$0xff]   ;;  %v1887_v10 = vld [vmem:[%s1997_s27 + $0x10] sm:$0xff]  }
  0x11   : > { %1784 = vmatprep.subr.bf16.mxu0 %v608_v4  ;;  %1852 = vmatprep.subr.bf16.mxu1 %v608_v4  ;;  %v1884_v7 = vld [vmem:[%s1997_s27 + $0x80] sm:$0xff]   ;;  %v1886_v9 = vld [vmem:[%s1997_s27 + $0x88] sm:$0xff]   ;;  %v1888_v11 = vld [vmem:[%s1997_s27 + $0x90] sm:$0xff]  }
  0x12   : > { %1785 = vmatpush3.bf16.msra.mxu0 %v608_v4  ;;  %1854 = vmatpush3.bf16.msra.mxu1 %v608_v4  ;;  %v1889_v12 = vld [vmem:[%s1997_s27 + $0x18] sm:$0xff]   ;;  %v1891_v14 = vld [vmem:[%s1997_s27 + $0x20] sm:$0xff]   ;;  %v1893_v16 = vld [vmem:[%s1997_s27 + $0x28] sm:$0xff]  }
  0x13   : > { %1786 = vmatprep.subr.bf16.mxu0 %v1882_v5  ;;  %1853 = vmatprep.subr.bf16.mxu1 %v1882_v5  ;;  %v1890_v13 = vld [vmem:[%s1997_s27 + $0x98] sm:$0xff]   ;;  %v1892_v15 = vld [vmem:[%s1997_s27 + $0xa0] sm:$0xff]   ;;  %v1894_v17 = vld [vmem:[%s1997_s27 + $0xa8] sm:$0xff]  }
  0x14   : > { %1788 = vmatprep.mubr.msk.bf16.mxu0 %vm506_vm2, %v1883_v6  ;;  %1820 = vmatprep.mubr.msk.bf16.mxu1 %vm506_vm2, %v1884_v7  ;;  %v1895_v18 = vld [vmem:[%s1997_s27 + $0x30] sm:$0xff]   ;;  %v1897_v20 = vld [vmem:[%s1997_s27 + $0x38] sm:$0xff]   ;;  %v1899_v22 = vld [vmem:[%s1997_s27 + $0x40] sm:$0xff]  }
  0x15   : > { %v1896_v19 = vld [vmem:[%s1997_s27 + $0xb0] sm:$0xff]   ;;  %v1898_v21 = vld [vmem:[%s1997_s27 + $0xb8] sm:$0xff]   ;;  %v1900_v23 = vld [vmem:[%s1997_s27 + $0xc0] sm:$0xff]  }
  0x16   : > { %1787 = vmatpush3.bf16.msra.mxu0 %v1882_v5  ;;  %1855 = vmatpush3.bf16.msra.mxu1 %v1882_v5  ;;  %v1901_v24 = vld [vmem:[%s1997_s27 + $0x48] sm:$0xff]   ;;  %v1903_v26 = vld [vmem:[%s1997_s27 + $0x50] sm:$0xff]   ;;  %v1905_v28 = vld [vmem:[%s1997_s27 + $0x58] sm:$0xff]  }
  0x17   : > { %v1902_v25 = vld [vmem:[%s1997_s27 + $0xc8] sm:$0xff]   ;;  %v1904_v27 = vld [vmem:[%s1997_s27 + $0xd0] sm:$0xff]   ;;  %v1906_v29 = vld [vmem:[%s1997_s27 + $0xd8] sm:$0xff]  }
  0x18   : > { %v1907_v30 = vld [vmem:[%s1997_s27 + $0x60] sm:$0xff]   ;;  %v1909_v32 = vld [vmem:[%s1997_s27 + $0x68] sm:$0xff]   ;;  %v1911_v34 = vld [vmem:[%s1997_s27 + $0x70] sm:$0xff]  }
  0x19   : > { %1789 = vmatmul.mubr.msk.bf16.vlgmr.msra.gmra.mxu0 %vm506_vm2, %v1885_v8  ;;  %1821 = vmatmul.mubr.msk.bf16.vlgmr.msra.gmra.mxu1 %vm506_vm2, %v1886_v9  ;;  %v1908_v31 = vld [vmem:[%s1997_s27 + $0xe0] sm:$0xff]   ;;  %v1910_v33 = vld [vmem:[%s1997_s27 + $0xe8] sm:$0xff]   ;;  %v1912_v35 = vld [vmem:[%s1997_s27 + $0xf0] sm:$0xff]  }
  0x1a   : > { %1792 = vmatprep.mubr.msk.bf16.mxu0 %vm506_vm2, %v1887_v10  ;;  %1824 = vmatprep.mubr.msk.bf16.mxu1 %vm506_vm2, %v1888_v11  ;;  %v1913_v36 = vld [vmem:[%s1997_s27 + $0x78] sm:$0xff]  }
  0x1b   : > { %v1914_v37 = vld [vmem:[%s1997_s27 + $0xf8] sm:$0xff]  }
  0x21   : > { %1793 = vmatmul.mubr.msk.bf16.gmra.mxu0 %vm506_vm2, %v1889_v12  ;;  %1825 = vmatmul.mubr.msk.bf16.gmra.mxu1 %vm506_vm2, %v1890_v13 }
  0x22   : > { %1796 = vmatprep.mubr.msk.bf16.mxu0 %vm506_vm2, %v1891_v14  ;;  %1828 = vmatprep.mubr.msk.bf16.mxu1 %vm506_vm2, %v1892_v15 }
  0x29   : > { %1797 = vmatmul.mubr.msk.bf16.gmra.mxu0 %vm506_vm2, %v1893_v16  ;;  %1829 = vmatmul.mubr.msk.bf16.gmra.mxu1 %vm506_vm2, %v1894_v17 }
  0x2a   : > { %1800 = vmatprep.mubr.msk.bf16.mxu0 %vm506_vm2, %v1895_v18  ;;  %1832 = vmatprep.mubr.msk.bf16.mxu1 %vm506_vm2, %v1896_v19 }
  0x31   : > { %1801 = vmatmul.mubr.msk.bf16.gmra.mxu0 %vm506_vm2, %v1897_v20  ;;  %1833 = vmatmul.mubr.msk.bf16.gmra.mxu1 %vm506_vm2, %v1898_v21 }
  0x32   : > { %1804 = vmatprep.mubr.msk.bf16.mxu0 %vm506_vm2, %v1899_v22  ;;  %1836 = vmatprep.mubr.msk.bf16.mxu1 %vm506_vm2, %v1900_v23 }
  0x39   : > { %1805 = vmatmul.mubr.msk.bf16.gmra.mxu0 %vm506_vm2, %v1901_v24  ;;  %1837 = vmatmul.mubr.msk.bf16.gmra.mxu1 %vm506_vm2, %v1902_v25 }
  0x3a   : > { %1808 = vmatprep.mubr.msk.bf16.mxu0 %vm506_vm2, %v1903_v26  ;;  %1840 = vmatprep.mubr.msk.bf16.mxu1 %vm506_vm2, %v1904_v27 }
  0x41   : > { %1809 = vmatmul.mubr.msk.bf16.gmra.mxu0 %vm506_vm2, %v1905_v28  ;;  %1841 = vmatmul.mubr.msk.bf16.gmra.mxu1 %vm506_vm2, %v1906_v29 }
  0x42   : > { %1812 = vmatprep.mubr.msk.bf16.mxu0 %vm506_vm2, %v1907_v30  ;;  %1844 = vmatprep.mubr.msk.bf16.mxu1 %vm506_vm2, %v1908_v31 }
  0x49   : > { %1813 = vmatmul.mubr.msk.bf16.gmra.mxu0 %vm506_vm2, %v1909_v32  ;;  %1845 = vmatmul.mubr.msk.bf16.gmra.mxu1 %vm506_vm2, %v1910_v33 }
  0x4a   : > { %1816 = vmatprep.mubr.msk.bf16.mxu0 %vm506_vm2, %v1911_v34  ;;  %1848 = vmatprep.mubr.msk.bf16.mxu1 %vm506_vm2, %v1912_v35 }
  0x51   : > { %1817 = vmatmul.mubr.msk.bf16.gmra.mxu0 %vm506_vm2, %v1913_v36  ;;  %1849 = vmatmul.mubr.msk.bf16.gmra.mxu1 %vm506_vm2, %v1914_v37 }
  0xd9   : > { %v1790_v39 = vpop.f32.mrf.mxu0  ;;  %v1822_v41 = vpop.f32.mrf.mxu1 }
  0xda   : > { %v908_v42 = vmul.f32 %v1790_v39, %v2066_v38  ;;  %v940_v43 = vmul.f32 %v1822_v41, %v2066_v38 }
  0xdb   : > { %v644_v44 = vpop.f32.mrf.mxu0  ;;  %v772_v45 = vpop.f32.mrf.mxu1 }
  0xdc   : > { %v979_v46 = vadd.f32 %v2071_v40, %v908_v42  ;;  %v1011_v47 = vadd.f32 %v2071_v40, %v940_v43  ;;  %v906_v48 = vmul.f32 %v2066_v38, %v644_v44  ;;  %v938_v49 = vmul.f32 %v2066_v38, %v772_v45 }
  0xdd   : > { %v1791_v50 = vpop.f32.mrf.mxu0  ;;  %v1823_v51 = vpop.f32.mrf.mxu1 }
  0xde   : > { %v1043_v52 = vmax.f32 %v979_v46, 0.0  ;;  %v1075_v53 = vmax.f32 %v1011_v47, 0.0  ;;  %v977_v54 = vadd.f32 %v2071_v40, %v906_v48  ;;  %v1009_v55 = vadd.f32 %v2071_v40, %v938_v49 }
  0xdf   : > { %v909_v56 = vmul.f32 %v1791_v50, %v2066_v38  ;;  %v941_v57 = vmul.f32 %v1823_v51, %v2066_v38  ;;  %v647_v58 = vpop.f32.mrf.mxu0  ;;  %v775_v59 = vpop.f32.mrf.mxu1 }
  0xe0   : > { %v1688_v60 = vpack.c.bf16 %v1043_v52, %v1043_v52  ;;  %v1720_v61 = vpack.c.bf16 %v1075_v53, %v1075_v53  ;;  %v1041_v62 = vmax.f32 %v977_v54, 0.0  ;;  %v1073_v63 = vmax.f32 %v1009_v55, 0.0 }
  0xe1   : > { %v980_v0 = vadd.f32 %v2071_v40, %v909_v56  ;;  %v1012_v1 = vadd.f32 %v2071_v40, %v941_v57  ;;  %v907_v2 = vmul.f32 %v2066_v38, %v647_v58  ;;  %v939_v3 = vmul.f32 %v2066_v38, %v775_v59  ;;  %v1794_v4 = vpop.f32.mrf.mxu0  ;;  %v1826_v5 = vpop.f32.mrf.mxu1 }
  0xe2   : > { %1364 = vst.msk [vmem:[%s2086_s8 + $0x8] sm:$0xf] %vm1361_vm3, %v1688_v60  ;;  %1396 = vst.msk [vmem:[%s2086_s8 + $0x88] sm:$0xf] %vm1361_vm3, %v1720_v61  ;;  %v1686_v6 = vpack.c.bf16 %v1041_v62, %v1041_v62  ;;  %v1718_v7 = vpack.c.bf16 %v1073_v63, %v1073_v63  ;;  %v912_v8 = vmul.f32 %v1794_v4, %v2066_v38 }
  0xe3   : > { %v944_v9 = vmul.f32 %v1826_v5, %v2066_v38  ;;  %v1044_v10 = vmax.f32 %v980_v0, 0.0  ;;  %v1076_v11 = vmax.f32 %v1012_v1, 0.0  ;;  %v978_v12 = vadd.f32 %v2071_v40, %v907_v2  ;;  %v660_v14 = vpop.f32.mrf.mxu0  ;;  %v788_v15 = vpop.f32.mrf.mxu1 }
  0xe4   : > { %v1010_v13 = vadd.f32 %v2071_v40, %v939_v3  ;;  %1362 = vst.msk [vmem:[%s2086_s8] sm:$0xf] %vm1361_vm3, %v1686_v6  ;;  %1394 = vst.msk [vmem:[%s2086_s8 + $0x80] sm:$0xf] %vm1361_vm3, %v1718_v7  ;;  %v983_v16 = vadd.f32 %v2071_v40, %v912_v8  ;;  %v910_v18 = vmul.f32 %v2066_v38, %v660_v14 }
  0xe5   : > { %v1015_v17 = vadd.f32 %v2071_v40, %v944_v9  ;;  %v942_v19 = vmul.f32 %v2066_v38, %v788_v15  ;;  %v1689_v20 = vpack.c.bf16 %v1044_v10, %v1044_v10  ;;  %v1721_v21 = vpack.c.bf16 %v1076_v11, %v1076_v11  ;;  %v1795_v24 = vpop.f32.mrf.mxu0  ;;  %v1827_v25 = vpop.f32.mrf.mxu1 }
  0xe6   : > { %v1042_v22 = vmax.f32 %v978_v12, 0.0  ;;  %v1074_v23 = vmax.f32 %v1010_v13, 0.0  ;;  %v1047_v26 = vmax.f32 %v983_v16, 0.0  ;;  %v981_v28 = vadd.f32 %v2071_v40, %v910_v18 }
  0xe7   : > { %v1079_v27 = vmax.f32 %v1015_v17, 0.0  ;;  %v1013_v29 = vadd.f32 %v2071_v40, %v942_v19  ;;  %1365 = vst.msk [vmem:[%s2086_s8 + $0xc] sm:$0xf] %vm1361_vm3, %v1689_v20  ;;  %1397 = vst.msk [vmem:[%s2086_s8 + $0x8c] sm:$0xf] %vm1361_vm3, %v1721_v21  ;;  %v913_v32 = vmul.f32 %v1795_v24, %v2066_v38  ;;  %v945_v33 = vmul.f32 %v1827_v25, %v2066_v38  ;;  %v663_v34 = vpop.f32.mrf.mxu0  ;;  %v791_v35 = vpop.f32.mrf.mxu1 }
  0xe8   : > { %v1687_v30 = vpack.c.bf16 %v1042_v22, %v1042_v22  ;;  %v1719_v31 = vpack.c.bf16 %v1074_v23, %v1074_v23  ;;  %v1692_v36 = vpack.c.bf16 %v1047_v26, %v1047_v26  ;;  %v1045_v39 = vmax.f32 %v981_v28, 0.0 }
  0xe9   : > { %v1724_v37 = vpack.c.bf16 %v1079_v27, %v1079_v27  ;;  %v1077_v41 = vmax.f32 %v1013_v29, 0.0  ;;  %v984_v42 = vadd.f32 %v2071_v40, %v913_v32  ;;  %v1016_v43 = vadd.f32 %v2071_v40, %v945_v33  ;;  %v1798_v46 = vpop.f32.mrf.mxu0  ;;  %v1830_v47 = vpop.f32.mrf.mxu1 }
  0xea   : > { %1363 = vst.msk [vmem:[%s2086_s8 + $0x4] sm:$0xf] %vm1361_vm3, %v1687_v30  ;;  %1395 = vst.msk [vmem:[%s2086_s8 + $0x84] sm:$0xf] %vm1361_vm3, %v1719_v31  ;;  %v911_v44 = vmul.f32 %v2066_v38, %v663_v34  ;;  %v943_v45 = vmul.f32 %v2066_v38, %v791_v35  ;;  %v1690_v48 = vpack.c.bf16 %v1045_v39, %v1045_v39 }
  0xeb   : > { %1368 = vst.msk [vmem:[%s2086_s8 + $0x18] sm:$0xf] %vm1361_vm3, %v1692_v36  ;;  %1400 = vst.msk [vmem:[%s2086_s8 + $0x98] sm:$0xf] %vm1361_vm3, %v1724_v37  ;;  %v1722_v49 = vpack.c.bf16 %v1077_v41, %v1077_v41  ;;  %v916_v50 = vmul.f32 %v1798_v46, %v2066_v38  ;;  %v948_v51 = vmul.f32 %v1830_v47, %v2066_v38  ;;  %v1048_v52 = vmax.f32 %v984_v42, 0.0  ;;  %v676_v56 = vpop.f32.mrf.mxu0  ;;  %v804_v57 = vpop.f32.mrf.mxu1 }
  0xec   : > { %v1080_v53 = vmax.f32 %v1016_v43, 0.0  ;;  %v982_v54 = vadd.f32 %v2071_v40, %v911_v44  ;;  %v1014_v55 = vadd.f32 %v2071_v40, %v943_v45  ;;  %1366 = vst.msk [vmem:[%s2086_s8 + $0x10] sm:$0xf] %vm1361_vm3, %v1690_v48  ;;  %v914_v60 = vmul.f32 %v2066_v38, %v676_v56 }
  0xed   : > { %1398 = vst.msk [vmem:[%s2086_s8 + $0x90] sm:$0xf] %vm1361_vm3, %v1722_v49  ;;  %v987_v58 = vadd.f32 %v2071_v40, %v916_v50  ;;  %v1019_v59 = vadd.f32 %v2071_v40, %v948_v51  ;;  %v946_v61 = vmul.f32 %v2066_v38, %v804_v57  ;;  %v1693_v62 = vpack.c.bf16 %v1048_v52, %v1048_v52  ;;  %v1799_v2 = vpop.f32.mrf.mxu0  ;;  %v1831_v3 = vpop.f32.mrf.mxu1 }
  0xee   : > { %v1725_v63 = vpack.c.bf16 %v1080_v53, %v1080_v53  ;;  %v1046_v0 = vmax.f32 %v982_v54, 0.0  ;;  %v1078_v1 = vmax.f32 %v1014_v55, 0.0  ;;  %v985_v6 = vadd.f32 %v2071_v40, %v914_v60 }
  0xef   : > { %v1051_v4 = vmax.f32 %v987_v58, 0.0  ;;  %v1083_v5 = vmax.f32 %v1019_v59, 0.0  ;;  %v1017_v7 = vadd.f32 %v2071_v40, %v946_v61  ;;  %1369 = vst.msk [vmem:[%s2086_s8 + $0x1c] sm:$0xf] %vm1361_vm3, %v1693_v62  ;;  %v917_v10 = vmul.f32 %v1799_v2, %v2066_v38  ;;  %v679_v12 = vpop.f32.mrf.mxu0  ;;  %v807_v13 = vpop.f32.mrf.mxu1 }
  0xf0   : > { %1401 = vst.msk [vmem:[%s2086_s8 + $0x9c] sm:$0xf] %vm1361_vm3, %v1725_v63  ;;  %v1691_v8 = vpack.c.bf16 %v1046_v0, %v1046_v0  ;;  %v1723_v9 = vpack.c.bf16 %v1078_v1, %v1078_v1  ;;  %v949_v11 = vmul.f32 %v1831_v3, %v2066_v38  ;;  %v1049_v16 = vmax.f32 %v985_v6, 0.0 }
  0xf1   : > { %v1696_v14 = vpack.c.bf16 %v1051_v4, %v1051_v4  ;;  %v1728_v15 = vpack.c.bf16 %v1083_v5, %v1083_v5  ;;  %v1081_v17 = vmax.f32 %v1017_v7, 0.0  ;;  %v988_v18 = vadd.f32 %v2071_v40, %v917_v10  ;;  %v1802_v22 = vpop.f32.mrf.mxu0  ;;  %v1834_v23 = vpop.f32.mrf.mxu1 }
  0xf2   : > { %1367 = vst.msk [vmem:[%s2086_s8 + $0x14] sm:$0xf] %vm1361_vm3, %v1691_v8  ;;  %1399 = vst.msk [vmem:[%s2086_s8 + $0x94] sm:$0xf] %vm1361_vm3, %v1723_v9  ;;  %v1020_v19 = vadd.f32 %v2071_v40, %v949_v11  ;;  %v915_v20 = vmul.f32 %v2066_v38, %v679_v12  ;;  %v947_v21 = vmul.f32 %v2066_v38, %v807_v13 }
  0xf3   : > { %1372 = vst.msk [vmem:[%s2086_s8 + $0x28] sm:$0xf] %vm1361_vm3, %v1696_v14  ;;  %1404 = vst.msk [vmem:[%s2086_s8 + $0xa8] sm:$0xf] %vm1361_vm3, %v1728_v15  ;;  %v1694_v24 = vpack.c.bf16 %v1049_v16, %v1049_v16  ;;  %v1726_v25 = vpack.c.bf16 %v1081_v17, %v1081_v17  ;;  %v920_v26 = vmul.f32 %v1802_v22, %v2066_v38  ;;  %v1052_v28 = vmax.f32 %v988_v18, 0.0  ;;  %v692_v32 = vpop.f32.mrf.mxu0  ;;  %v820_v33 = vpop.f32.mrf.mxu1 }
  0xf4   : > { %v952_v27 = vmul.f32 %v1834_v23, %v2066_v38  ;;  %v1084_v29 = vmax.f32 %v1020_v19, 0.0  ;;  %v986_v30 = vadd.f32 %v2071_v40, %v915_v20  ;;  %v1018_v31 = vadd.f32 %v2071_v40, %v947_v21 }
  0xf5   : > { %1370 = vst.msk [vmem:[%s2086_s8 + $0x20] sm:$0xf] %vm1361_vm3, %v1694_v24  ;;  %1402 = vst.msk [vmem:[%s2086_s8 + $0xa0] sm:$0xf] %vm1361_vm3, %v1726_v25  ;;  %v991_v34 = vadd.f32 %v2071_v40, %v920_v26  ;;  %v918_v36 = vmul.f32 %v2066_v38, %v692_v32  ;;  %v950_v37 = vmul.f32 %v2066_v38, %v820_v33  ;;  %v1803_v44 = vpop.f32.mrf.mxu0  ;;  %v1835_v45 = vpop.f32.mrf.mxu1 }
  0xf6   : > { %v1023_v35 = vadd.f32 %v2071_v40, %v952_v27  ;;  %v1697_v39 = vpack.c.bf16 %v1052_v28, %v1052_v28  ;;  %v1729_v41 = vpack.c.bf16 %v1084_v29, %v1084_v29  ;;  %v1050_v42 = vmax.f32 %v986_v30, 0.0 }
  0xf7   : > { %v1082_v43 = vmax.f32 %v1018_v31, 0.0  ;;  %v1055_v46 = vmax.f32 %v991_v34, 0.0  ;;  %v989_v48 = vadd.f32 %v2071_v40, %v918_v36  ;;  %v1021_v49 = vadd.f32 %v2071_v40, %v950_v37  ;;  %v695_v54 = vpop.f32.mrf.mxu0  ;;  %v823_v55 = vpop.f32.mrf.mxu1 }
  0xf8   : > { %v1087_v47 = vmax.f32 %v1023_v35, 0.0  ;;  %1373 = vst.msk [vmem:[%s2086_s8 + $0x2c] sm:$0xf] %vm1361_vm3, %v1697_v39  ;;  %1405 = vst.msk [vmem:[%s2086_s8 + $0xac] sm:$0xf] %vm1361_vm3, %v1729_v41  ;;  %v1695_v50 = vpack.c.bf16 %v1050_v42, %v1050_v42  ;;  %v921_v52 = vmul.f32 %v1803_v44, %v2066_v38  ;;  %v953_v53 = vmul.f32 %v1835_v45, %v2066_v38 }
  0xf9   : > { %v1727_v51 = vpack.c.bf16 %v1082_v43, %v1082_v43  ;;  %v1700_v56 = vpack.c.bf16 %v1055_v46, %v1055_v46  ;;  %v1053_v58 = vmax.f32 %v989_v48, 0.0  ;;  %v1085_v59 = vmax.f32 %v1021_v49, 0.0  ;;  %v1806_v0 = vpop.f32.mrf.mxu0  ;;  %v1838_v1 = vpop.f32.mrf.mxu1 }
  0xfa   : > { %v1732_v57 = vpack.c.bf16 %v1087_v47, %v1087_v47  ;;  %1371 = vst.msk [vmem:[%s2086_s8 + $0x24] sm:$0xf] %vm1361_vm3, %v1695_v50  ;;  %v992_v60 = vadd.f32 %v2071_v40, %v921_v52  ;;  %v1024_v61 = vadd.f32 %v2071_v40, %v953_v53  ;;  %v919_v62 = vmul.f32 %v2066_v38, %v695_v54 }
  0xfb   : > { %1403 = vst.msk [vmem:[%s2086_s8 + $0xa4] sm:$0xf] %vm1361_vm3, %v1727_v51  ;;  %v951_v63 = vmul.f32 %v2066_v38, %v823_v55  ;;  %1376 = vst.msk [vmem:[%s2086_s8 + $0x38] sm:$0xf] %vm1361_vm3, %v1700_v56  ;;  %v1698_v2 = vpack.c.bf16 %v1053_v58, %v1053_v58  ;;  %v1730_v3 = vpack.c.bf16 %v1085_v59, %v1085_v59  ;;  %v708_v10 = vpop.f32.mrf.mxu0  ;;  %v836_v11 = vpop.f32.mrf.mxu1 }
  0xfc   : > { %1408 = vst.msk [vmem:[%s2086_s8 + $0xb8] sm:$0xf] %vm1361_vm3, %v1732_v57  ;;  %v924_v4 = vmul.f32 %v1806_v0, %v2066_v38  ;;  %v956_v5 = vmul.f32 %v1838_v1, %v2066_v38  ;;  %v1056_v6 = vmax.f32 %v992_v60, 0.0  ;;  %v1088_v7 = vmax.f32 %v1024_v61, 0.0 }
  0xfd   : > { %v990_v8 = vadd.f32 %v2071_v40, %v919_v62  ;;  %v1022_v9 = vadd.f32 %v2071_v40, %v951_v63  ;;  %1374 = vst.msk [vmem:[%s2086_s8 + $0x30] sm:$0xf] %vm1361_vm3, %v1698_v2  ;;  %1406 = vst.msk [vmem:[%s2086_s8 + $0xb0] sm:$0xf] %vm1361_vm3, %v1730_v3  ;;  %v922_v14 = vmul.f32 %v2066_v38, %v708_v10  ;;  %v1807_v20 = vpop.f32.mrf.mxu0  ;;  %v1839_v21 = vpop.f32.mrf.mxu1 }
  0xfe   : > { %v995_v12 = vadd.f32 %v2071_v40, %v924_v4  ;;  %v1027_v13 = vadd.f32 %v2071_v40, %v956_v5  ;;  %v954_v15 = vmul.f32 %v2066_v38, %v836_v11  ;;  %v1701_v16 = vpack.c.bf16 %v1056_v6, %v1056_v6 }
  0xff   : > { %v1733_v17 = vpack.c.bf16 %v1088_v7, %v1088_v7  ;;  %v1054_v18 = vmax.f32 %v990_v8, 0.0  ;;  %v1086_v19 = vmax.f32 %v1022_v9, 0.0  ;;  %v993_v24 = vadd.f32 %v2071_v40, %v922_v14  ;;  %v711_v30 = vpop.f32.mrf.mxu0  ;;  %v839_v31 = vpop.f32.mrf.mxu1 }
 0x100   : > { %v1059_v22 = vmax.f32 %v995_v12, 0.0  ;;  %v1091_v23 = vmax.f32 %v1027_v13, 0.0  ;;  %v1025_v25 = vadd.f32 %v2071_v40, %v954_v15  ;;  %1377 = vst.msk [vmem:[%s2086_s8 + $0x3c] sm:$0xf] %vm1361_vm3, %v1701_v16  ;;  %v925_v28 = vmul.f32 %v1807_v20, %v2066_v38 }
 0x101   : > { %1409 = vst.msk [vmem:[%s2086_s8 + $0xbc] sm:$0xf] %vm1361_vm3, %v1733_v17  ;;  %v1699_v26 = vpack.c.bf16 %v1054_v18, %v1054_v18  ;;  %v1731_v27 = vpack.c.bf16 %v1086_v19, %v1086_v19  ;;  %v957_v29 = vmul.f32 %v1839_v21, %v2066_v38  ;;  %v1057_v34 = vmax.f32 %v993_v24, 0.0  ;;  %v1810_v42 = vpop.f32.mrf.mxu0  ;;  %v1842_v43 = vpop.f32.mrf.mxu1 }
 0x102   : > { %v1704_v32 = vpack.c.bf16 %v1059_v22, %v1059_v22  ;;  %v1736_v33 = vpack.c.bf16 %v1091_v23, %v1091_v23  ;;  %v1089_v35 = vmax.f32 %v1025_v25, 0.0  ;;  %v996_v36 = vadd.f32 %v2071_v40, %v925_v28 }
 0x103   : > { %1375 = vst.msk [vmem:[%s2086_s8 + $0x34] sm:$0xf] %vm1361_vm3, %v1699_v26  ;;  %1407 = vst.msk [vmem:[%s2086_s8 + $0xb4] sm:$0xf] %vm1361_vm3, %v1731_v27  ;;  %v1028_v37 = vadd.f32 %v2071_v40, %v957_v29  ;;  %v923_v39 = vmul.f32 %v2066_v38, %v711_v30  ;;  %v955_v41 = vmul.f32 %v2066_v38, %v839_v31  ;;  %v724_v52 = vpop.f32.mrf.mxu0  ;;  %v852_v53 = vpop.f32.mrf.mxu1 }
 0x104   : > { %1380 = vst.msk [vmem:[%s2086_s8 + $0x48] sm:$0xf] %vm1361_vm3, %v1704_v32  ;;  %1412 = vst.msk [vmem:[%s2086_s8 + $0xc8] sm:$0xf] %vm1361_vm3, %v1736_v33  ;;  %v1702_v44 = vpack.c.bf16 %v1057_v34, %v1057_v34  ;;  %v1734_v45 = vpack.c.bf16 %v1089_v35, %v1089_v35  ;;  %v928_v46 = vmul.f32 %v1810_v42, %v2066_v38  ;;  %v1060_v48 = vmax.f32 %v996_v36, 0.0 }
 0x105   : > { %v960_v47 = vmul.f32 %v1842_v43, %v2066_v38  ;;  %v1092_v49 = vmax.f32 %v1028_v37, 0.0  ;;  %v994_v50 = vadd.f32 %v2071_v40, %v923_v39  ;;  %v1026_v51 = vadd.f32 %v2071_v40, %v955_v41  ;;  %v1811_v62 = vpop.f32.mrf.mxu0  ;;  %v1843_v63 = vpop.f32.mrf.mxu1 }
 0x106   : > { %1378 = vst.msk [vmem:[%s2086_s8 + $0x40] sm:$0xf] %vm1361_vm3, %v1702_v44  ;;  %1410 = vst.msk [vmem:[%s2086_s8 + $0xc0] sm:$0xf] %vm1361_vm3, %v1734_v45  ;;  %v999_v54 = vadd.f32 %v2071_v40, %v928_v46  ;;  %v926_v56 = vmul.f32 %v2066_v38, %v724_v52  ;;  %v958_v57 = vmul.f32 %v2066_v38, %v852_v53 }
 0x107   : > { %v1031_v55 = vadd.f32 %v2071_v40, %v960_v47  ;;  %v1705_v58 = vpack.c.bf16 %v1060_v48, %v1060_v48  ;;  %v1737_v59 = vpack.c.bf16 %v1092_v49, %v1092_v49  ;;  %v1058_v60 = vmax.f32 %v994_v50, 0.0  ;;  %v727_v8 = vpop.f32.mrf.mxu0  ;;  %v855_v9 = vpop.f32.mrf.mxu1 }
 0x108   : > { %v1090_v61 = vmax.f32 %v1026_v51, 0.0  ;;  %v1063_v0 = vmax.f32 %v999_v54, 0.0  ;;  %v997_v2 = vadd.f32 %v2071_v40, %v926_v56  ;;  %v1029_v3 = vadd.f32 %v2071_v40, %v958_v57 }
 0x109   : > { %v1095_v1 = vmax.f32 %v1031_v55, 0.0  ;;  %1381 = vst.msk [vmem:[%s2086_s8 + $0x4c] sm:$0xf] %vm1361_vm3, %v1705_v58  ;;  %1413 = vst.msk [vmem:[%s2086_s8 + $0xcc] sm:$0xf] %vm1361_vm3, %v1737_v59  ;;  %v1703_v4 = vpack.c.bf16 %v1058_v60, %v1058_v60  ;;  %v929_v6 = vmul.f32 %v1811_v62, %v2066_v38  ;;  %v961_v7 = vmul.f32 %v1843_v63, %v2066_v38  ;;  %v1814_v18 = vpop.f32.mrf.mxu0  ;;  %v1846_v19 = vpop.f32.mrf.mxu1 }
 0x10a   : > { %v1735_v5 = vpack.c.bf16 %v1090_v61, %v1090_v61  ;;  %v1708_v10 = vpack.c.bf16 %v1063_v0, %v1063_v0  ;;  %v1061_v12 = vmax.f32 %v997_v2, 0.0  ;;  %v1093_v13 = vmax.f32 %v1029_v3, 0.0 }
 0x10b   : > { %v1740_v11 = vpack.c.bf16 %v1095_v1, %v1095_v1  ;;  %1379 = vst.msk [vmem:[%s2086_s8 + $0x44] sm:$0xf] %vm1361_vm3, %v1703_v4  ;;  %v1000_v14 = vadd.f32 %v2071_v40, %v929_v6  ;;  %v1032_v15 = vadd.f32 %v2071_v40, %v961_v7  ;;  %v927_v16 = vmul.f32 %v2066_v38, %v727_v8  ;;  %v740_v28 = vpop.f32.mrf.mxu0  ;;  %v868_v29 = vpop.f32.mrf.mxu1 }
 0x10c   : > { %1411 = vst.msk [vmem:[%s2086_s8 + $0xc4] sm:$0xf] %vm1361_vm3, %v1735_v5  ;;  %v959_v17 = vmul.f32 %v2066_v38, %v855_v9  ;;  %1384 = vst.msk [vmem:[%s2086_s8 + $0x58] sm:$0xf] %vm1361_vm3, %v1708_v10  ;;  %v1706_v20 = vpack.c.bf16 %v1061_v12, %v1061_v12  ;;  %v1738_v21 = vpack.c.bf16 %v1093_v13, %v1093_v13 }
 0x10d   : > { %1416 = vst.msk [vmem:[%s2086_s8 + $0xd8] sm:$0xf] %vm1361_vm3, %v1740_v11  ;;  %v932_v22 = vmul.f32 %v1814_v18, %v2066_v38  ;;  %v964_v23 = vmul.f32 %v1846_v19, %v2066_v38  ;;  %v1064_v24 = vmax.f32 %v1000_v14, 0.0  ;;  %v1096_v25 = vmax.f32 %v1032_v15, 0.0  ;;  %v1815_v39 = vpop.f32.mrf.mxu0  ;;  %v1847_v41 = vpop.f32.mrf.mxu1 }
 0x10e   : > { %v998_v26 = vadd.f32 %v2071_v40, %v927_v16  ;;  %v1030_v27 = vadd.f32 %v2071_v40, %v959_v17  ;;  %1382 = vst.msk [vmem:[%s2086_s8 + $0x50] sm:$0xf] %vm1361_vm3, %v1706_v20  ;;  %1414 = vst.msk [vmem:[%s2086_s8 + $0xd0] sm:$0xf] %vm1361_vm3, %v1738_v21  ;;  %v930_v32 = vmul.f32 %v2066_v38, %v740_v28 }
 0x10f   : > { %v1003_v30 = vadd.f32 %v2071_v40, %v932_v22  ;;  %v1035_v31 = vadd.f32 %v2071_v40, %v964_v23  ;;  %v962_v33 = vmul.f32 %v2066_v38, %v868_v29  ;;  %v1709_v34 = vpack.c.bf16 %v1064_v24, %v1064_v24  ;;  %v743_v50 = vpop.f32.mrf.mxu0  ;;  %v871_v51 = vpop.f32.mrf.mxu1 }
 0x110   : > { %v1741_v35 = vpack.c.bf16 %v1096_v25, %v1096_v25  ;;  %v1062_v36 = vmax.f32 %v998_v26, 0.0  ;;  %v1094_v37 = vmax.f32 %v1030_v27, 0.0  ;;  %v1001_v44 = vadd.f32 %v2071_v40, %v930_v32 }
 0x111   : > { %v1067_v42 = vmax.f32 %v1003_v30, 0.0  ;;  %v1099_v43 = vmax.f32 %v1035_v31, 0.0  ;;  %v1033_v45 = vadd.f32 %v2071_v40, %v962_v33  ;;  %1385 = vst.msk [vmem:[%s2086_s8 + $0x5c] sm:$0xf] %vm1361_vm3, %v1709_v34  ;;  %v933_v48 = vmul.f32 %v1815_v39, %v2066_v38  ;;  %v1818_v60 = vpop.f32.mrf.mxu0  ;;  %v1850_v61 = vpop.f32.mrf.mxu1 }
 0x112   : > { %1417 = vst.msk [vmem:[%s2086_s8 + $0xdc] sm:$0xf] %vm1361_vm3, %v1741_v35  ;;  %v1707_v46 = vpack.c.bf16 %v1062_v36, %v1062_v36  ;;  %v1739_v47 = vpack.c.bf16 %v1094_v37, %v1094_v37  ;;  %v965_v49 = vmul.f32 %v1847_v41, %v2066_v38  ;;  %v1065_v54 = vmax.f32 %v1001_v44, 0.0 }
 0x113   : > { %v1712_v52 = vpack.c.bf16 %v1067_v42, %v1067_v42  ;;  %v1744_v53 = vpack.c.bf16 %v1099_v43, %v1099_v43  ;;  %v1097_v55 = vmax.f32 %v1033_v45, 0.0  ;;  %v1004_v56 = vadd.f32 %v2071_v40, %v933_v48  ;;  %v756_v6 = vpop.f32.mrf.mxu0  ;;  %v884_v7 = vpop.f32.mrf.mxu1 }
 0x114   : > { %1383 = vst.msk [vmem:[%s2086_s8 + $0x54] sm:$0xf] %vm1361_vm3, %v1707_v46  ;;  %1415 = vst.msk [vmem:[%s2086_s8 + $0xd4] sm:$0xf] %vm1361_vm3, %v1739_v47  ;;  %v1036_v57 = vadd.f32 %v2071_v40, %v965_v49  ;;  %v931_v58 = vmul.f32 %v2066_v38, %v743_v50  ;;  %v963_v59 = vmul.f32 %v2066_v38, %v871_v51 }
 0x115   : > { %1388 = vst.msk [vmem:[%s2086_s8 + $0x68] sm:$0xf] %vm1361_vm3, %v1712_v52  ;;  %1420 = vst.msk [vmem:[%s2086_s8 + $0xe8] sm:$0xf] %vm1361_vm3, %v1744_v53  ;;  %v1710_v62 = vpack.c.bf16 %v1065_v54, %v1065_v54  ;;  %v1742_v63 = vpack.c.bf16 %v1097_v55, %v1097_v55  ;;  %v936_v0 = vmul.f32 %v1818_v60, %v2066_v38  ;;  %v1068_v2 = vmax.f32 %v1004_v56, 0.0  ;;  %v1819_v16 = vpop.f32.mrf.mxu0  ;;  %v1851_v17 = vpop.f32.mrf.mxu1 }
 0x116   : > { %v968_v1 = vmul.f32 %v1850_v61, %v2066_v38  ;;  %v1100_v3 = vmax.f32 %v1036_v57, 0.0  ;;  %v1002_v4 = vadd.f32 %v2071_v40, %v931_v58  ;;  %v1034_v5 = vadd.f32 %v2071_v40, %v963_v59 }
 0x117   : > { %1386 = vst.msk [vmem:[%s2086_s8 + $0x60] sm:$0xf] %vm1361_vm3, %v1710_v62  ;;  %1418 = vst.msk [vmem:[%s2086_s8 + $0xe0] sm:$0xf] %vm1361_vm3, %v1742_v63  ;;  %v1007_v8 = vadd.f32 %v2071_v40, %v936_v0  ;;  %v934_v10 = vmul.f32 %v2066_v38, %v756_v6  ;;  %v966_v11 = vmul.f32 %v2066_v38, %v884_v7  ;;  %v759_v26 = vpop.f32.mrf.mxu0  ;;  %v887_v27 = vpop.f32.mrf.mxu1 }
 0x118   : > { %v1039_v9 = vadd.f32 %v2071_v40, %v968_v1  ;;  %v1713_v12 = vpack.c.bf16 %v1068_v2, %v1068_v2  ;;  %v1745_v13 = vpack.c.bf16 %v1100_v3, %v1100_v3  ;;  %v1066_v14 = vmax.f32 %v1002_v4, 0.0 }
 0x119   : > { %v1098_v15 = vmax.f32 %v1034_v5, 0.0  ;;  %v1071_v18 = vmax.f32 %v1007_v8, 0.0  ;;  %v1005_v20 = vadd.f32 %v2071_v40, %v934_v10  ;;  %v1037_v21 = vadd.f32 %v2071_v40, %v966_v11 }
 0x11a   : > { %v1103_v19 = vmax.f32 %v1039_v9, 0.0  ;;  %1389 = vst.msk [vmem:[%s2086_s8 + $0x6c] sm:$0xf] %vm1361_vm3, %v1713_v12  ;;  %1421 = vst.msk [vmem:[%s2086_s8 + $0xec] sm:$0xf] %vm1361_vm3, %v1745_v13  ;;  %v1711_v22 = vpack.c.bf16 %v1066_v14, %v1066_v14  ;;  %v937_v24 = vmul.f32 %v1819_v16, %v2066_v38  ;;  %v969_v25 = vmul.f32 %v1851_v17, %v2066_v38 }
 0x11b   : > { %v1743_v23 = vpack.c.bf16 %v1098_v15, %v1098_v15  ;;  %v1716_v28 = vpack.c.bf16 %v1071_v18, %v1071_v18  ;;  %v1069_v30 = vmax.f32 %v1005_v20, 0.0  ;;  %v1101_v31 = vmax.f32 %v1037_v21, 0.0 }
 0x11c   : > { %v1748_v29 = vpack.c.bf16 %v1103_v19, %v1103_v19  ;;  %1387 = vst.msk [vmem:[%s2086_s8 + $0x64] sm:$0xf] %vm1361_vm3, %v1711_v22  ;;  %v1008_v32 = vadd.f32 %v2071_v40, %v937_v24  ;;  %v1040_v33 = vadd.f32 %v2071_v40, %v969_v25  ;;  %v935_v34 = vmul.f32 %v2066_v38, %v759_v26 }
 0x11d   : > { %1419 = vst.msk [vmem:[%s2086_s8 + $0xe4] sm:$0xf] %vm1361_vm3, %v1743_v23  ;;  %v967_v35 = vmul.f32 %v2066_v38, %v887_v27  ;;  %1392 = vst.msk [vmem:[%s2086_s8 + $0x78] sm:$0xf] %vm1361_vm3, %v1716_v28  ;;  %v1714_v36 = vpack.c.bf16 %v1069_v30, %v1069_v30  ;;  %v1746_v37 = vpack.c.bf16 %v1101_v31, %v1101_v31 }
 0x11e   : > { %1424 = vst.msk [vmem:[%s2086_s8 + $0xf8] sm:$0xf] %vm1361_vm3, %v1748_v29  ;;  %v1072_v39 = vmax.f32 %v1008_v32, 0.0  ;;  %v1104_v41 = vmax.f32 %v1040_v33, 0.0  ;;  %v1006_v42 = vadd.f32 %v2071_v40, %v935_v34 }
 0x11f   : > { %v1038_v43 = vadd.f32 %v2071_v40, %v967_v35  ;;  %1390 = vst.msk [vmem:[%s2086_s8 + $0x70] sm:$0xf] %vm1361_vm3, %v1714_v36  ;;  %1422 = vst.msk [vmem:[%s2086_s8 + $0xf0] sm:$0xf] %vm1361_vm3, %v1746_v37 }
 0x120   : > { %v1717_v38 = vpack.c.bf16 %v1072_v39, %v1072_v39  ;;  %v1749_v44 = vpack.c.bf16 %v1104_v41, %v1104_v41  ;;  %v1070_v45 = vmax.f32 %v1006_v42, 0.0 }
 0x121   : > { %v1102_v46 = vmax.f32 %v1038_v43, 0.0 }
 0x122   : > { %1393 = vst.msk [vmem:[%s2086_s8 + $0x7c] sm:$0xf] %vm1361_vm3, %v1717_v38  ;;  %1425 = vst.msk [vmem:[%s2086_s8 + $0xfc] sm:$0xf] %vm1361_vm3, %v1749_v44  ;;  %v1715_v47 = vpack.c.bf16 %v1070_v45, %v1070_v45 }
 0x123   : > { %v1747_v48 = vpack.c.bf16 %v1102_v46, %v1102_v46 }
 0x124   : > { %1391 = vst.msk [vmem:[%s2086_s8 + $0x74] sm:$0xf] %vm1361_vm3, %v1715_v47 }
 0x125   : > { %1423 = vst.msk [vmem:[%s2086_s8 + $0xf4] sm:$0xf] %vm1361_vm3, %v1747_v48 }
 0x126 PF: > { %s14_s17 = sadd.s32 1, %s1937_s17   ;;  %s2350_s15 = smov %s1933_s16 }
 0x127   : > { %p11_p5 = scmp.ge.s32.totalorder %s14_s17, 51   ;;  %s2351_s16 = smov %s2353_s18 }
 0x129   :  { %13 = sbr.rel (!%p11_p5) target bundleno = 2 (0x2), region = 75 }

</bundles_post_ra>
